<compile_context>
chip_gen: v7x
topology: tpu7x:2x2x1
jax: 0.10.0
libtpu: 0.0.40
codegen_flags: <defaults>
</compile_context>

<pallas_src>
import jax
import jax.numpy as jnp
from jax.experimental import pallas as pl
from jax.experimental.pallas import tpu as pltpu

LANE = 128
N_CLASSES = 10
NEG_INF = -1e30          # softmax mask value for padded fc4 lanes (f32 bias only)

F_IN = 784               # input features (full-dim block, no padding needed)
H1, H2, H3 = 512, 128, 128   # padded hidden widths: 500->512, 128, 64->128


def _round_up(n, m):
    return (n + m - 1) // m * m


def _pad_cols(a, to):
    return jnp.pad(a, ((0, 0), (0, to - a.shape[1])))


def _pad_rows(a, to):
    return jnp.pad(a, ((0, to - a.shape[0]), (0, 0)))


# ----------------------------------------------------------------------------
# Kernel: one batch tile through the whole fused MLP + softmax.
# ----------------------------------------------------------------------------
def mlp_kernel(x_ref,
               w1_ref, b1_ref,
               w2_ref, b2_ref,
               w3_ref, b3_ref,
               w4_ref, b4_ref,
               o_ref):
    # Activations bf16 (MXU-native), accumulate in f32.
    x = x_ref[...].astype(jnp.bfloat16)

    h = jnp.dot(x, w1_ref[...], preferred_element_type=jnp.float32)
    h = jnp.maximum(h + b1_ref[...], 0.0).astype(jnp.bfloat16)

    h = jnp.dot(h, w2_ref[...], preferred_element_type=jnp.float32)
    h = jnp.maximum(h + b2_ref[...], 0.0).astype(jnp.bfloat16)

    h = jnp.dot(h, w3_ref[...], preferred_element_type=jnp.float32)
    h = jnp.maximum(h + b3_ref[...], 0.0).astype(jnp.bfloat16)

    # fc4 is lane-padded to 128 columns; padded bias lanes hold NEG_INF (f32)
    # so exp() of those lanes is exactly 0 and the normalization is unchanged.
    logits = jnp.dot(h, w4_ref[...], preferred_element_type=jnp.float32)
    logits = logits + b4_ref[...]

    m = jnp.max(logits, axis=-1, keepdims=True)
    e = jnp.exp(logits - m)
    denom = jnp.sum(e, axis=-1, keepdims=True)
    o_ref[...] = (e * pl.reciprocal(denom, approx=False)).astype(o_ref.dtype)


# ----------------------------------------------------------------------------
# Parameter preparation: bf16 weights, f32 biases, 128-aligned padding.
# ----------------------------------------------------------------------------
def prepare_params(params):
    w1 = params["w1"].astype(jnp.bfloat16)   # (784, 500)
    b1 = params["b1"].astype(jnp.float32)    # (1, 500)
    w2 = params["w2"].astype(jnp.bfloat16)   # (500, 128)
    b2 = params["b2"].astype(jnp.float32)    # (1, 128)
    w3 = params["w3"].astype(jnp.bfloat16)   # (128, 64)
    b3 = params["b3"].astype(jnp.float32)    # (1, 64)
    w4 = params["w4"].astype(jnp.bfloat16)   # (64, 10)
    b4 = params["b4"].astype(jnp.float32)    # (1, 10)

    p = {}
    p["w1"] = _pad_cols(w1, H1)                      # zero cols 500->512
    p["b1"] = _pad_cols(b1, H1)                      # zero bias -> relu(0)=0
    p["w2"] = _pad_rows(w2, H1)                      # zero rows 500->512
    p["b2"] = b2                                     # already 128
    p["w3"] = _pad_cols(w3, H3)                      # zero cols 64->128
    p["b3"] = _pad_cols(b3, H3)
    p["w4"] = _pad_cols(_pad_rows(w4, H3), LANE)     # rows 64->128, cols 10->128
    p["b4"] = jnp.pad(b4, ((0, 0), (0, LANE - N_CLASSES)),
                      constant_values=NEG_INF)       # f32 sentinel lanes
    return p


# ----------------------------------------------------------------------------
# Wrapper
# ----------------------------------------------------------------------------
def mlp_forward(x, prepared, tile_b=512, out_dtype=jnp.float32):
    """x: [B, 784] float32 (bf16 also accepted). Returns [B, 10] softmax probs."""
    B, F = x.shape
    assert F == F_IN

    # >=2 grid steps when possible so the "parallel" batch axis spans both v7x
    # TensorCores; tiny batches collapse to one (partial) tile of >=8 rows.
    tile_b = max(8, min(tile_b, _round_up(pl.cdiv(B, 2), 8)))
    grid = (pl.cdiv(B, tile_b),)   # ragged trailing tile -> masked partial block

    def resident_spec(a):
        # Constant block index -> stays VMEM-resident across batch tiles.
        return pl.BlockSpec(a.shape, lambda i: (0, 0))

    args = (x,
            prepared["w1"], prepared["b1"],
            prepared["w2"], prepared["b2"],
            prepared["w3"], prepared["b3"],
            prepared["w4"], prepared["b4"])

    in_specs = [pl.BlockSpec((tile_b, F), lambda i: (i, 0))]
    in_specs += [resident_spec(a) for a in args[1:]]

    weight_bytes = sum(int(prepared[k].size) * prepared[k].dtype.itemsize
                       for k in prepared)
    cost = pl.CostEstimate(
        flops=2 * B * (F_IN * H1 + H1 * H2 + H2 * H3 + H3 * LANE),
        transcendentals=B * LANE,
        bytes_accessed=(int(x.size) * x.dtype.itemsize
                        + B * LANE * jnp.dtype(out_dtype).itemsize
                        + weight_bytes),
    )

    out = pl.pallas_call(
        mlp_kernel,
        out_shape=jax.ShapeDtypeStruct((B, LANE), out_dtype),
        grid=grid,
        in_specs=in_specs,
        out_specs=pl.BlockSpec((tile_b, LANE), lambda i: (i, 0)),
        compiler_params=pltpu.CompilerParams(
            dimension_semantics=("parallel",)),   # v7x megacore; no-op on v5e/v6e
        cost_estimate=cost,
    )(*args)
    return out[:, :N_CLASSES]


# ----------------------------------------------------------------------------
# Init + references
# ----------------------------------------------------------------------------
def init_params(key):
    """Deterministic init mimicking nn.Linear (stored transposed, f32)."""
    dims = [(784, 500), (500, 128), (128, 64), (64, 10)]
    params = {}
    for i, (fan_in, fan_out) in enumerate(dims, start=1):
        key, kw, kb = jax.random.split(key, 3)
        bound = 1.0 / jnp.sqrt(fan_in)
        # PyTorch Linear weight is (out, in); we store (in, out) for x @ W.
        params[f"w{i}"] = jax.random.uniform(kw, (fan_in, fan_out), jnp.float32,
                                             -bound, bound)
        params[f"b{i}"] = jax.random.uniform(kb, (1, fan_out), jnp.float32,
                                             -bound, bound)
    return params


def reference_forward_f32(x, params):
    """Exact f32 reference matching the PyTorch module semantics."""
    h = jnp.maximum(x @ params["w1"] + params["b1"], 0.0)
    h = jnp.maximum(h @ params["w2"] + params["b2"], 0.0)
    h = jnp.maximum(h @ params["w3"] + params["b3"], 0.0)
    logits = h @ params["w4"] + params["b4"]
    return jax.nn.softmax(logits, axis=1)


def reference_forward_bf16(x, params):
    """XLA reference with the same bf16 quantization the kernel uses
    (unpadded weights; the zero padding in the kernel is exactly inert)."""
    h = x.astype(jnp.bfloat16)
    for i in (1, 2, 3):
        h = jnp.maximum(
            jnp.dot(h, params[f"w{i}"].astype(jnp.bfloat16),
                    preferred_element_type=jnp.float32)
            + params[f"b{i}"].astype(jnp.float32), 0.0).astype(jnp.bfloat16)
    logits = jnp.dot(h, params["w4"].astype(jnp.bfloat16),
                     preferred_element_type=jnp.float32) \
        + params["b4"].astype(jnp.float32)
    return jax.nn.softmax(logits, axis=1)


if __name__ == "__main__":
    key = jax.random.PRNGKey(0)
    kx, kp, kx2 = jax.random.split(key, 3)

    params = init_params(kp)
    prepared = prepare_params(params)

    # --- small batch (module-consistent shape), single tile ---
    B = 8
    x = jax.random.normal(kx, (B, 784), jnp.float32)
    out = jax.block_until_ready(mlp_forward(x, prepared))
    assert out.shape == (B, N_CLASSES)
    assert bool(jnp.all(jnp.isfinite(out)))
    assert jnp.allclose(jnp.sum(out, axis=1), 1.0, atol=1e-5)
    assert jnp.allclose(out, reference_forward_bf16(x, params), atol=1e-3, rtol=1e-3)
    assert jnp.allclose(out, reference_forward_f32(x, params), atol=3e-2)

    # --- larger batch exercising the multi-step grid + masked partial block ---
    B2 = 300
    x2 = jax.random.normal(kx2, (B2, 784), jnp.float32)
    out2 = jax.block_until_ready(mlp_forward(x2, prepared, tile_b=512))
    assert out2.shape == (B2, N_CLASSES)
    assert bool(jnp.all(jnp.isfinite(out2)))          # no garbage-row leakage
    assert jnp.allclose(jnp.sum(out2, axis=1), 1.0, atol=1e-5)
    assert jnp.allclose(out2, reference_forward_bf16(x2, params),
                        atol=1e-3, rtol=1e-3)

    print("KERNEL_OK")
</pallas_src>

<mosaic_0001>
module attributes {stable_mosaic.version = 11 : i64} {
  func.func @mlp_kernel(%arg0: i32, %arg1: memref<8x784xf32, #tpu.memory_space<vmem>>, %arg2: memref<784x512xbf16, #tpu.memory_space<vmem>>, %arg3: memref<1x512xf32, #tpu.memory_space<vmem>>, %arg4: memref<512x128xbf16, #tpu.memory_space<vmem>>, %arg5: memref<1x128xf32, #tpu.memory_space<vmem>>, %arg6: memref<128x128xbf16, #tpu.memory_space<vmem>>, %arg7: memref<1x128xf32, #tpu.memory_space<vmem>>, %arg8: memref<128x128xbf16, #tpu.memory_space<vmem>>, %arg9: memref<1x128xf32, #tpu.memory_space<vmem>>, %arg10: memref<8x128xf32, #tpu.memory_space<vmem>>) attributes {dimension_semantics = [#tpu.dimension_semantics<parallel>], iteration_bounds = array<i64: 1>, scalar_prefetch = 0 : i64, scratch_operands = 0 : i64, tpu.core_type = #tpu.core_type<tc>, window_params = [{transform_indices = @transform_0, window_bounds = array<i64: 8, 784>}, {pipeline_mode = #tpu.pipeline_mode<synchronous>, transform_indices = @transform_1, window_bounds = array<i64: 784, 512>}, {pipeline_mode = #tpu.pipeline_mode<synchronous>, transform_indices = @transform_2, window_bounds = array<i64: 1, 512>}, {pipeline_mode = #tpu.pipeline_mode<synchronous>, transform_indices = @transform_3, window_bounds = array<i64: 512, 128>}, {pipeline_mode = #tpu.pipeline_mode<synchronous>, transform_indices = @transform_4, window_bounds = array<i64: 1, 128>}, {pipeline_mode = #tpu.pipeline_mode<synchronous>, transform_indices = @transform_5, window_bounds = array<i64: 128, 128>}, {pipeline_mode = #tpu.pipeline_mode<synchronous>, transform_indices = @transform_6, window_bounds = array<i64: 1, 128>}, {pipeline_mode = #tpu.pipeline_mode<synchronous>, transform_indices = @transform_7, window_bounds = array<i64: 128, 128>}, {pipeline_mode = #tpu.pipeline_mode<synchronous>, transform_indices = @transform_8, window_bounds = array<i64: 1, 128>}, {transform_indices = @transform_9, window_bounds = array<i64: 8, 128>}]} {
    %c0 = arith.constant 0 : index
    %c0_0 = arith.constant 0 : index
    %0 = vector.load %arg1[%c0, %c0_0] : memref<8x784xf32, #tpu.memory_space<vmem>>, vector<8x784xf32>
    %1 = arith.truncf %0 : vector<8x784xf32> to vector<8x784xbf16>
    %c0_1 = arith.constant 0 : index
    %c0_2 = arith.constant 0 : index
    %2 = vector.load %arg2[%c0_1, %c0_2] : memref<784x512xbf16, #tpu.memory_space<vmem>>, vector<784x512xbf16>
    %cst = arith.constant dense<0.000000e+00> : vector<8x512xf32>
    %3 = tpu.matmul %1, %2, %cst {dimension_numbers = #tpu.dot_dimension_numbers<[1], [0], [0], [1], [0, 0, 1, 1], [], []>} : vector<8x784xbf16>, vector<784x512xbf16>, vector<8x512xf32> -> vector<8x512xf32>
    %c0_3 = arith.constant 0 : index
    %c0_4 = arith.constant 0 : index
    %4 = vector.load %arg3[%c0_3, %c0_4] : memref<1x512xf32, #tpu.memory_space<vmem>>, vector<1x512xf32>
    %5 = vector.broadcast %4 : vector<1x512xf32> to vector<8x512xf32>
    %6 = arith.addf %3, %5 : vector<8x512xf32>
    %cst_5 = arith.constant 0.000000e+00 : f32
    %7 = vector.broadcast %cst_5 : f32 to vector<8x512xf32>
    %8 = arith.maximumf %6, %7 : vector<8x512xf32>
    %9 = arith.truncf %8 : vector<8x512xf32> to vector<8x512xbf16>
    %c0_6 = arith.constant 0 : index
    %c0_7 = arith.constant 0 : index
    %10 = vector.load %arg4[%c0_6, %c0_7] : memref<512x128xbf16, #tpu.memory_space<vmem>>, vector<512x128xbf16>
    %cst_8 = arith.constant dense<0.000000e+00> : vector<8x128xf32>
    %11 = tpu.matmul %9, %10, %cst_8 {dimension_numbers = #tpu.dot_dimension_numbers<[1], [0], [0], [1], [0, 0, 1, 1], [], []>} : vector<8x512xbf16>, vector<512x128xbf16>, vector<8x128xf32> -> vector<8x128xf32>
    %c0_9 = arith.constant 0 : index
    %c0_10 = arith.constant 0 : index
    %12 = vector.load %arg5[%c0_9, %c0_10] : memref<1x128xf32, #tpu.memory_space<vmem>>, vector<1x128xf32>
    %13 = vector.broadcast %12 : vector<1x128xf32> to vector<8x128xf32>
    %14 = arith.addf %11, %13 : vector<8x128xf32>
    %cst_11 = arith.constant 0.000000e+00 : f32
    %15 = vector.broadcast %cst_11 : f32 to vector<8x128xf32>
    %16 = arith.maximumf %14, %15 : vector<8x128xf32>
    %17 = arith.truncf %16 : vector<8x128xf32> to vector<8x128xbf16>
    %c0_12 = arith.constant 0 : index
    %c0_13 = arith.constant 0 : index
    %18 = vector.load %arg6[%c0_12, %c0_13] : memref<128x128xbf16, #tpu.memory_space<vmem>>, vector<128x128xbf16>
    %cst_14 = arith.constant dense<0.000000e+00> : vector<8x128xf32>
    %19 = tpu.matmul %17, %18, %cst_14 {dimension_numbers = #tpu.dot_dimension_numbers<[1], [0], [0], [1], [0, 0, 1, 1], [], []>} : vector<8x128xbf16>, vector<128x128xbf16>, vector<8x128xf32> -> vector<8x128xf32>
    %c0_15 = arith.constant 0 : index
    %c0_16 = arith.constant 0 : index
    %20 = vector.load %arg7[%c0_15, %c0_16] : memref<1x128xf32, #tpu.memory_space<vmem>>, vector<1x128xf32>
    %21 = vector.broadcast %20 : vector<1x128xf32> to vector<8x128xf32>
    %22 = arith.addf %19, %21 : vector<8x128xf32>
    %cst_17 = arith.constant 0.000000e+00 : f32
    %23 = vector.broadcast %cst_17 : f32 to vector<8x128xf32>
    %24 = arith.maximumf %22, %23 : vector<8x128xf32>
    %25 = arith.truncf %24 : vector<8x128xf32> to vector<8x128xbf16>
    %c0_18 = arith.constant 0 : index
    %c0_19 = arith.constant 0 : index
    %26 = vector.load %arg8[%c0_18, %c0_19] : memref<128x128xbf16, #tpu.memory_space<vmem>>, vector<128x128xbf16>
    %cst_20 = arith.constant dense<0.000000e+00> : vector<8x128xf32>
    %27 = tpu.matmul %25, %26, %cst_20 {dimension_numbers = #tpu.dot_dimension_numbers<[1], [0], [0], [1], [0, 0, 1, 1], [], []>} : vector<8x128xbf16>, vector<128x128xbf16>, vector<8x128xf32> -> vector<8x128xf32>
    %c0_21 = arith.constant 0 : index
    %c0_22 = arith.constant 0 : index
    %28 = vector.load %arg9[%c0_21, %c0_22] : memref<1x128xf32, #tpu.memory_space<vmem>>, vector<1x128xf32>
    %29 = vector.broadcast %28 : vector<1x128xf32> to vector<8x128xf32>
    %30 = arith.addf %27, %29 : vector<8x128xf32>
    %cst_23 = arith.constant dense<0xFF800000> : vector<8xf32>
    %31 = vector.multi_reduction <maximumf>, %30, %cst_23 [1] : vector<8x128xf32> to vector<8xf32>
    %32 = vector.shape_cast %31 : vector<8xf32> to vector<8x1xf32>
    %33 = vector.broadcast %32 : vector<8x1xf32> to vector<8x128xf32>
    %34 = arith.subf %30, %33 : vector<8x128xf32>
    %35 = math.exp %34 : vector<8x128xf32>
    %cst_24 = arith.constant dense<0.000000e+00> : vector<8xf32>
    %36 = vector.multi_reduction <add>, %35, %cst_24 [1] : vector<8x128xf32> to vector<8xf32>
    %37 = vector.shape_cast %36 : vector<8xf32> to vector<8x1xf32>
    %38 = tpu.reciprocal %37 : vector<8x1xf32> -> vector<8x1xf32>
    %39 = vector.broadcast %38 : vector<8x1xf32> to vector<8x128xf32>
    %40 = arith.mulf %35, %39 : vector<8x128xf32>
    %c0_25 = arith.constant 0 : index
    %c0_26 = arith.constant 0 : index
    %41 = vector.load %arg10[%c0_25, %c0_26] : memref<8x128xf32, #tpu.memory_space<vmem>>, vector<8x128xf32>
    tpu.vector_store %arg10[%c0_25, %c0_26], %40 {strides = array<i32>} : memref<8x128xf32, #tpu.memory_space<vmem>>, vector<8x128xf32>,
    return
  }
  func.func @transform_0(%arg0: i32) -> (i32, i32) {
    %c0_i32 = arith.constant 0 : i32
    %c0_i32_0 = arith.constant 0 : i32
    return %arg0, %c0_i32 : i32, i32
  }
  func.func @transform_1(%arg0: i32) -> (i32, i32) {
    %c0_i32 = arith.constant 0 : i32
    %c0_i32_0 = arith.constant 0 : i32
    %c0_i32_1 = arith.constant 0 : i32
    return %c0_i32, %c0_i32_0 : i32, i32
  }
  func.func @transform_2(%arg0: i32) -> (i32, i32) {
    %c0_i32 = arith.constant 0 : i32
    %c0_i32_0 = arith.constant 0 : i32
    %c0_i32_1 = arith.constant 0 : i32
    return %c0_i32, %c0_i32_0 : i32, i32
  }
  func.func @transform_3(%arg0: i32) -> (i32, i32) {
    %c0_i32 = arith.constant 0 : i32
    %c0_i32_0 = arith.constant 0 : i32
    %c0_i32_1 = arith.constant 0 : i32
    return %c0_i32, %c0_i32_0 : i32, i32
  }
  func.func @transform_4(%arg0: i32) -> (i32, i32) {
    %c0_i32 = arith.constant 0 : i32
    %c0_i32_0 = arith.constant 0 : i32
    %c0_i32_1 = arith.constant 0 : i32
    return %c0_i32, %c0_i32_0 : i32, i32
  }
  func.func @transform_5(%arg0: i32) -> (i32, i32) {
    %c0_i32 = arith.constant 0 : i32
    %c0_i32_0 = arith.constant 0 : i32
    %c0_i32_1 = arith.constant 0 : i32
    return %c0_i32, %c0_i32_0 : i32, i32
  }
  func.func @transform_6(%arg0: i32) -> (i32, i32) {
    %c0_i32 = arith.constant 0 : i32
    %c0_i32_0 = arith.constant 0 : i32
    %c0_i32_1 = arith.constant 0 : i32
    return %c0_i32, %c0_i32_0 : i32, i32
  }
  func.func @transform_7(%arg0: i32) -> (i32, i32) {
    %c0_i32 = arith.constant 0 : i32
    %c0_i32_0 = arith.constant 0 : i32
    %c0_i32_1 = arith.constant 0 : i32
    return %c0_i32, %c0_i32_0 : i32, i32
  }
  func.func @transform_8(%arg0: i32) -> (i32, i32) {
    %c0_i32 = arith.constant 0 : i32
    %c0_i32_0 = arith.constant 0 : i32
    %c0_i32_1 = arith.constant 0 : i32
    return %c0_i32, %c0_i32_0 : i32, i32
  }
  func.func @transform_9(%arg0: i32) -> (i32, i32) {
    %c0_i32 = arith.constant 0 : i32
    %c0_i32_0 = arith.constant 0 : i32
    return %arg0, %c0_i32 : i32, i32
  }
}

</mosaic_0001>

<bundles_post_ra>
// kernel: tpu_custom_call.1
= control target key start
LH: loop header
LB: loop body
LE: loop exit
PB: predicated region body
PF: predicated region fallthrough
CT: control target
= control target key end

     0   :  { %14 = vsyncpa [#allocation3], 0  ;;  %s3300_s0 = inlined_call_operand.hbm [shape: f32[8,784], index: 0, kind: input, shape index: {}]   ;;  %s3301_s1 = inlined_call_operand.hbm [shape: bf16[784,512], index: 1, kind: input, shape index: {}]   ;;  %s3302_s2 = inlined_call_operand.vmem [shape: f32[1,512], index: 2, kind: input, shape index: {}]   ;;  %s3303_s3 = inlined_call_operand.hbm [shape: bf16[512,128], index: 3, kind: input, shape index: {}]   ;;  %s3304_s4 = inlined_call_operand.vmem [shape: f32[1,128], index: 4, kind: input, shape index: {}]   ;;  %s3305_s5 = inlined_call_operand.hbm [shape: bf16[128,128], index: 5, kind: input, shape index: {}]   ;;  %s3306_s6 = inlined_call_operand.vmem [shape: f32[1,128], index: 6, kind: input, shape index: {}]   ;;  %s3307_s7 = inlined_call_operand.hbm [shape: bf16[128,128], index: 7, kind: input, shape index: {}]   ;;  %s3308_s8 = inlined_call_operand.vmem [shape: f32[1,128], index: 8, kind: input, shape index: {}]   ;;  %s3309_s9 = inlined_call_operand.hbm [shape: f32[8,128], index: 9, kind: output, shape index: {}]  }
   0x1   :  { %15 = vsyncpa [#allocation6], 0 }
   0x2   :  { %16 = vsyncpa [#allocation9], 0 }
   0x3   :  { %17 = vsyncpa [#allocation4], 0  ;;  %s3126_s30 = smov [#allocation5]   ;;  %s2986_s13 = scalar_lea.hbm %s3301_s1, 25088 }
   0x4   :  { %s33_s10 = sshll.u32 %s3126_s30, 4  ;;  %p2987_p0 = scmp.ne.s32.totalorder %s3301_s1, %s2986_s13  ;;  %s34_s10 = int_to_ptr.vmem [resolvable:$true] %s33_s10 }
   0x5   :  { %p2990_p1 = scmp.lt.u32.totalorder %s2986_s13, %s3301_s1 }
   0x7   :  { %p2992_p2 = pnand %p2990_p1, %p2987_p0 }
   0x9   :  { %2995 = shalt.err (!%p2992_p2)
}
   0xa   :  { %s2996_s18 = scalar_lea.vmem %s34_s10, 25088  ;;  %p3001_p4 = scmp.lt.s32.totalorder %s34_s10, %s34_s10 }
   0xb   :  { %p2997_p3 = scmp.ne.s32.totalorder %s34_s10, %s2996_s18  ;;  %p3002_p5 = scmp.lt.s32.totalorder %s2996_s18, %s2996_s18 }
   0xd   :  { %p3003_p6 = por %p3002_p5, %p3001_p4 }
   0xf   :  { %p3004_p7 = pnand %p3003_p6, %p2997_p3 }
  0x11   :  { %3007 = shalt.err (!%p3004_p7)
}
  0x12   :  { %s3127_s19 = smov 256   ;;  %s3128_s20 = smov 16  }
  0x13   :  { %39 = dma.hbm_to_vmem [thread:$0]  %s3301_s1, 25088, %s34_s10, [#allocation6], %s3127_s19, %s3127_s19, %s3128_s20  }
  0x14   :  { %s3129_s23 = smov [#allocation8]   ;;  %s3130_s25 = smov [#allocation2]  }
  0x15   :  { %s61_s24 = sshll.u32 %s3129_s23, 4  ;;  %s24_s26 = sshll.u32 %s3130_s25, 4  ;;  %s62_s24 = int_to_ptr.vmem [resolvable:$true] %s61_s24  ;;  %s25_s26 = int_to_ptr.vmem [resolvable:$true] %s24_s26 }
  0x16   :  { %s3008_s29 = scalar_lea.hbm %s3305_s5, 1024 }
  0x17   :  { %p3009_p8 = scmp.ne.s32.totalorder %s3305_s5, %s3008_s29  ;;  %p3012_p9 = scmp.lt.u32.totalorder %s3008_s29, %s3305_s5 }
  0x19   :  { %p3014_p10 = pnand %p3012_p9, %p3009_p8 }
  0x1b   :  { %3017 = shalt.err (!%p3014_p10)
}
  0x1c   :  { %s3018_s1 = scalar_lea.vmem %s62_s24, 1024  ;;  %p3023_p12 = scmp.lt.s32.totalorder %s62_s24, %s62_s24 }
  0x1d   :  { %p3019_p11 = scmp.ne.s32.totalorder %s62_s24, %s3018_s1  ;;  %p3024_p13 = scmp.lt.s32.totalorder %s3018_s1, %s3018_s1 }
  0x1f   :  { %p3025_p0 = por %p3024_p13, %p3023_p12 }
  0x21   :  { %p3026_p1 = pnand %p3025_p0, %p3019_p11 }
  0x23   :  { %3029 = shalt.err (!%p3026_p1)
}
  0x24   :  { %s3131_s10 = smov 64   ;;  %s3132_s14 = smov 4  }
  0x25   :  { %67 = dma.hbm_to_vmem [thread:$0]  %s3305_s5, 1024, %s62_s24, [#allocation9], %s3131_s10, %s3131_s10, %s3132_s14  }
  0x26   :  { %s3030_s19 = scalar_lea.hbm %s3300_s0, 896 }
  0x27   :  { %p3031_p2 = scmp.ne.s32.totalorder %s3300_s0, %s3030_s19  ;;  %p3034_p3 = scmp.lt.u32.totalorder %s3030_s19, %s3300_s0 }
  0x29   :  { %p3036_p4 = pnand %p3034_p3, %p3031_p2 }
  0x2b   :  { %3039 = shalt.err (!%p3036_p4)
}
  0x2c   :  { %s3040_s25 = scalar_lea.vmem %s25_s26, 896  ;;  %p3045_p6 = scmp.lt.s32.totalorder %s25_s26, %s25_s26 }
  0x2d   :  { %p3041_p5 = scmp.ne.s32.totalorder %s25_s26, %s3040_s25  ;;  %p3046_p7 = scmp.lt.s32.totalorder %s3040_s25, %s3040_s25 }
  0x2f   :  { %p3047_p8 = por %p3046_p7, %p3045_p6 }
  0x31   :  { %p3048_p9 = pnand %p3047_p8, %p3041_p5 }
  0x33   :  { %3051 = shalt.err (!%p3048_p9)
}
  0x34   :  { %27 = dma.hbm_to_vmem [thread:$0]  %s3300_s0, 896, %s25_s26, [#allocation3]  }
  0x35   :  { %s3133_s27 = smov [#allocation7]   ;;  %s3134_s29 = smov [#allocation10]  }
  0x36   :  { %s47_s28 = sshll.u32 %s3133_s27, 4  ;;  %s75_s30 = sshll.u32 %s3134_s29, 4  ;;  %s48_s28 = int_to_ptr.vmem [resolvable:$true] %s47_s28  ;;  %s76_s30 = int_to_ptr.vmem [resolvable:$true] %s75_s30 }
  0x37   :  { %s3052_s13 = scalar_lea.hbm %s3303_s3, 4096 }
  0x38   :  { %p3053_p10 = scmp.ne.s32.totalorder %s3303_s3, %s3052_s13  ;;  %p3056_p11 = scmp.lt.u32.totalorder %s3052_s13, %s3303_s3 }
  0x3a   :  { %p3058_p12 = pnand %p3056_p11, %p3053_p10 }
  0x3c   :  { %3061 = shalt.err (!%p3058_p12)
}
  0x3d   :  { %s3062_s0 = scalar_lea.vmem %s48_s28, 4096  ;;  %p3067_p0 = scmp.lt.s32.totalorder %s48_s28, %s48_s28 }
  0x3e   :  { %p3063_p13 = scmp.ne.s32.totalorder %s48_s28, %s3062_s0  ;;  %p3068_p1 = scmp.lt.s32.totalorder %s3062_s0, %s3062_s0 }
  0x40   :  { %p3069_p2 = por %p3068_p1, %p3067_p0 }
  0x42   :  { %p3070_p3 = pnand %p3069_p2, %p3063_p13 }
  0x44   :  { %3073 = shalt.err (!%p3070_p3)
}
  0x45   :  { %53 = dma.hbm_to_vmem [thread:$0]  %s3303_s3, 4096, %s48_s28, [#allocation6], %s3131_s10, %s3131_s10, %s3132_s14  }
  0x46   :  { %s3074_s21 = scalar_lea.hbm %s3307_s7, 1024 }
  0x47   :  { %p3075_p4 = scmp.ne.s32.totalorder %s3307_s7, %s3074_s21  ;;  %p3078_p5 = scmp.lt.u32.totalorder %s3074_s21, %s3307_s7 }
  0x49   :  { %p3080_p6 = pnand %p3078_p5, %p3075_p4 }
  0x4b   :  { %3083 = shalt.err (!%p3080_p6)
}
  0x4c   :  { %s3084_s24 = scalar_lea.vmem %s76_s30, 1024  ;;  %p3089_p8 = scmp.lt.s32.totalorder %s76_s30, %s76_s30 }
  0x4d   :  { %p3085_p7 = scmp.ne.s32.totalorder %s76_s30, %s3084_s24  ;;  %p3090_p9 = scmp.lt.s32.totalorder %s3084_s24, %s3084_s24 }
  0x4f   :  { %p3091_p10 = por %p3090_p9, %p3089_p8 }
  0x51   :  { %p3092_p11 = pnand %p3091_p10, %p3085_p7 }
  0x53   :  { %3095 = shalt.err (!%p3092_p11)
}
  0x54   :  { %81 = dma.hbm_to_vmem [thread:$0]  %s3307_s7, 1024, %s76_s30, [#allocation9], %s3131_s10, %s3131_s10, %s3132_s14  }
  0x55   :  { %3118 = dma.done.wait [#allocation3], 896  }
  0x56   :  { %3119 = vsyncadd [#allocation3], 4294966400 }
  0x57   :  { %3120 = dma.done.wait [#allocation6], 29184  }
  0x58   :  { %3121 = vsyncadd [#allocation6], 4294938112 }
  0x59   :  { %3122 = dma.done.wait [#allocation9], 2048  }
  0x5a   :  { %3123 = vsyncadd [#allocation9], 4294965248  ;;  %v2640_v0 = vld [vmem:[#allocation5 + $0x4] ss:$16 sps:$4 sm:$0xff]   ;;  %v2642_v1 = vld [vmem:[#allocation5 + $0xc] ss:$16 sps:$4 sm:$0xff]  }
  0x5b   :  { %1316 = vmatprep.subr.bf16.mxu0 %v2640_v0  ;;  %v2644_v2 = vld [vmem:[#allocation5] ss:$16 sps:$4 sm:$0xff]   ;;  %v2645_v3 = vld [vmem:[#allocation5 + $0x8] ss:$16 sps:$4 sm:$0xff]   ;;  %1480 = vmatprep.subr.bf16.mxu1 %v2642_v1  ;;  %v2646_v4 = vld [vmem:[#allocation5 + $0x24] ss:$16 sps:$4 sm:$0xff]  }
  0x5c   :  { %1317 = vmatpush1.bf16.msra.mxu0 %v2644_v2  ;;  %1481 = vmatpush1.bf16.msra.mxu1 %v2645_v3  ;;  %v2648_v5 = vld [vmem:[#allocation5 + $0x2c] ss:$16 sps:$4 sm:$0xff]   ;;  %v2650_v6 = vld [vmem:[#allocation5 + $0x20] ss:$16 sps:$4 sm:$0xff]   ;;  %v2651_v7 = vld [vmem:[#allocation5 + $0x28] ss:$16 sps:$4 sm:$0xff]  }
  0x5d   :  { %1318 = vmatprep.subr.bf16.mxu0 %v2646_v4  ;;  %1482 = vmatprep.subr.bf16.mxu1 %v2648_v5  ;;  %v2652_v8 = vld [vmem:[#allocation5 + $0x44] ss:$16 sps:$4 sm:$0xff]   ;;  %v2654_v9 = vld [vmem:[#allocation5 + $0x4c] ss:$16 sps:$4 sm:$0xff]   ;;  %v2656_v10 = vld [vmem:[#allocation5 + $0x40] ss:$16 sps:$4 sm:$0xff]  }
  0x5e   :  { %v2657_v11 = vld [vmem:[#allocation5 + $0x48] ss:$16 sps:$4 sm:$0xff]   ;;  %v2658_v12 = vld [vmem:[#allocation5 + $0x64] ss:$16 sps:$4 sm:$0xff]   ;;  %v2660_v13 = vld [vmem:[#allocation5 + $0x6c] ss:$16 sps:$4 sm:$0xff]  }
  0x5f   :  { %v2662_v14 = vld [vmem:[#allocation5 + $0x60] ss:$16 sps:$4 sm:$0xff]   ;;  %v2663_v15 = vld [vmem:[#allocation5 + $0x68] ss:$16 sps:$4 sm:$0xff]   ;;  %v2664_v16 = vld [vmem:[#allocation5 + $0x84] ss:$16 sps:$4 sm:$0xff]  }
  0x60   :  { %1319 = vmatpush1.bf16.msra.mxu0 %v2650_v6  ;;  %1483 = vmatpush1.bf16.msra.mxu1 %v2651_v7  ;;  %v2666_v17 = vld [vmem:[#allocation5 + $0x8c] ss:$16 sps:$4 sm:$0xff]   ;;  %v2668_v18 = vld [vmem:[#allocation5 + $0x80] ss:$16 sps:$4 sm:$0xff]   ;;  %v2669_v19 = vld [vmem:[#allocation5 + $0x88] ss:$16 sps:$4 sm:$0xff]  }
  0x61   :  { %1320 = vmatprep.subr.bf16.mxu0 %v2652_v8  ;;  %1484 = vmatprep.subr.bf16.mxu1 %v2654_v9  ;;  %v2670_v20 = vld [vmem:[#allocation5 + $0xa4] ss:$16 sps:$4 sm:$0xff]   ;;  %v2672_v21 = vld [vmem:[#allocation5 + $0xac] ss:$16 sps:$4 sm:$0xff]   ;;  %v2674_v22 = vld [vmem:[#allocation5 + $0xa0] ss:$16 sps:$4 sm:$0xff]  }
  0x62   :  { %v2675_v23 = vld [vmem:[#allocation5 + $0xa8] ss:$16 sps:$4 sm:$0xff]   ;;  %v2676_v24 = vld [vmem:[#allocation5 + $0xc4] ss:$16 sps:$4 sm:$0xff]   ;;  %v2678_v25 = vld [vmem:[#allocation5 + $0xcc] ss:$16 sps:$4 sm:$0xff]  }
  0x63   :  { %v2680_v26 = vld [vmem:[#allocation5 + $0xc0] ss:$16 sps:$4 sm:$0xff]   ;;  %v2681_v27 = vld [vmem:[#allocation5 + $0xc8] ss:$16 sps:$4 sm:$0xff]   ;;  %v2682_v28 = vld [vmem:[#allocation5 + $0xe4] ss:$16 sps:$4 sm:$0xff]  }
  0x64   :  { %1321 = vmatpush1.bf16.msra.mxu0 %v2656_v10  ;;  %1485 = vmatpush1.bf16.msra.mxu1 %v2657_v11  ;;  %v2684_v29 = vld [vmem:[#allocation5 + $0xec] ss:$16 sps:$4 sm:$0xff]   ;;  %v2686_v30 = vld [vmem:[#allocation5 + $0xe0] ss:$16 sps:$4 sm:$0xff]   ;;  %v2687_v31 = vld [vmem:[#allocation5 + $0xe8] ss:$16 sps:$4 sm:$0xff]  }
  0x65   :  { %1322 = vmatprep.subr.bf16.mxu0 %v2658_v12  ;;  %1486 = vmatprep.subr.bf16.mxu1 %v2660_v13  ;;  %v2688_v32 = vld [vmem:[#allocation5 + $0x104] ss:$16 sps:$4 sm:$0xff]   ;;  %v2690_v33 = vld [vmem:[#allocation5 + $0x10c] ss:$16 sps:$4 sm:$0xff]   ;;  %v2692_v34 = vld [vmem:[#allocation5 + $0x100] ss:$16 sps:$4 sm:$0xff]  }
  0x66   :  { %v2693_v35 = vld [vmem:[#allocation5 + $0x108] ss:$16 sps:$4 sm:$0xff]   ;;  %v2694_v36 = vld [vmem:[#allocation5 + $0x124] ss:$16 sps:$4 sm:$0xff]   ;;  %v2696_v37 = vld [vmem:[#allocation5 + $0x12c] ss:$16 sps:$4 sm:$0xff]  }
  0x67   :  { %v2698_v38 = vld [vmem:[#allocation5 + $0x120] ss:$16 sps:$4 sm:$0xff]   ;;  %v2699_v39 = vld [vmem:[#allocation5 + $0x128] ss:$16 sps:$4 sm:$0xff]   ;;  %v2700_v40 = vld [vmem:[#allocation5 + $0x144] ss:$16 sps:$4 sm:$0xff]  }
  0x68   :  { %1323 = vmatpush1.bf16.msra.mxu0 %v2662_v14  ;;  %1487 = vmatpush1.bf16.msra.mxu1 %v2663_v15  ;;  %v2702_v41 = vld [vmem:[#allocation5 + $0x14c] ss:$16 sps:$4 sm:$0xff]   ;;  %v2704_v42 = vld [vmem:[#allocation5 + $0x140] ss:$16 sps:$4 sm:$0xff]   ;;  %v2705_v43 = vld [vmem:[#allocation5 + $0x148] ss:$16 sps:$4 sm:$0xff]  }
  0x69   :  { %1324 = vmatprep.subr.bf16.mxu0 %v2664_v16  ;;  %1488 = vmatprep.subr.bf16.mxu1 %v2666_v17  ;;  %v2706_v44 = vld [vmem:[#allocation5 + $0x164] ss:$16 sps:$4 sm:$0xff]   ;;  %v2708_v45 = vld [vmem:[#allocation5 + $0x16c] ss:$16 sps:$4 sm:$0xff]   ;;  %v2710_v47 = vld [vmem:[#allocation5 + $0x160] ss:$16 sps:$4 sm:$0xff]  }
  0x6a   :  { %v101_v46 = vld [vmem:[#allocation2 + $0x8] sm:$0xff]  ;;  %v2711_v49 = vld [vmem:[#allocation5 + $0x168] ss:$16 sps:$4 sm:$0xff]   ;;  %v2714_v51 = vld [vmem:[#allocation5 + $0x18c] ss:$16 sps:$4 sm:$0xff]   ;;  %vm1312_vm0 = vcmask 130048  }
  0x6b   :  { %v108_v48 = vpack.c.bf16 %v101_v46, %v101_v46  ;;  %v2712_v50 = vld [vmem:[#allocation5 + $0x184] ss:$16 sps:$4 sm:$0xff]   ;;  %v2716_v52 = vld [vmem:[#allocation5 + $0x180] ss:$16 sps:$4 sm:$0xff]   ;;  %v2717_v53 = vld [vmem:[#allocation5 + $0x188] ss:$16 sps:$4 sm:$0xff]  }
  0x6c   :  { %1325 = vmatpush1.bf16.msra.mxu0 %v2668_v18  ;;  %1489 = vmatpush1.bf16.msra.mxu1 %v2669_v19  ;;  %v2718_v54 = vld [vmem:[#allocation5 + $0x1a4] ss:$16 sps:$4 sm:$0xff]   ;;  %v2720_v55 = vld [vmem:[#allocation5 + $0x1ac] ss:$16 sps:$4 sm:$0xff]   ;;  %v2722_v56 = vld [vmem:[#allocation5 + $0x1a0] ss:$16 sps:$4 sm:$0xff]  }
  0x6d   :  { %1326 = vmatprep.subr.bf16.mxu0 %v2670_v20  ;;  %1490 = vmatprep.subr.bf16.mxu1 %v2672_v21  ;;  %v2723_v57 = vld [vmem:[#allocation5 + $0x1a8] ss:$16 sps:$4 sm:$0xff]   ;;  %v2724_v58 = vld [vmem:[#allocation5 + $0x1c4] ss:$16 sps:$4 sm:$0xff]   ;;  %v2726_v59 = vld [vmem:[#allocation5 + $0x1cc] ss:$16 sps:$4 sm:$0xff]  }
  0x6e   :  { %1348 = vmatprep.mubr.bf16.mxu0 %v108_v48  ;;  %1512 = vmatprep.mubr.bf16.mxu1 %v108_v48  ;;  %v2728_v60 = vld [vmem:[#allocation5 + $0x1c0] ss:$16 sps:$4 sm:$0xff]   ;;  %v2729_v61 = vld [vmem:[#allocation5 + $0x1c8] ss:$16 sps:$4 sm:$0xff]   ;;  %v2730_v62 = vld [vmem:[#allocation5 + $0x1e4] ss:$16 sps:$4 sm:$0xff]  }
  0x6f   :  { %v2732_v63 = vld [vmem:[#allocation5 + $0x1ec] ss:$16 sps:$4 sm:$0xff]   ;;  %v2734_v0 = vld [vmem:[#allocation5 + $0x1e0] ss:$16 sps:$4 sm:$0xff]   ;;  %v2735_v1 = vld [vmem:[#allocation5 + $0x1e8] ss:$16 sps:$4 sm:$0xff]  }
  0x70   :  { %1327 = vmatpush1.bf16.msra.mxu0 %v2674_v22  ;;  %1491 = vmatpush1.bf16.msra.mxu1 %v2675_v23  ;;  %v100_v2 = vld [vmem:[#allocation2] sm:$0xff]  ;;  %v2738_v3 = vld [vmem:[#allocation5 + $0x204] ss:$16 sps:$4 sm:$0xff]   ;;  %v2736_v6 = vld [vmem:[#allocation5 + $0x200] ss:$16 sps:$4 sm:$0xff]   ;;  %vm3137_vm1 = vmmov 0  }
  0x71   :  { %1328 = vmatprep.subr.bf16.mxu0 %v2676_v24  ;;  %1492 = vmatprep.subr.bf16.mxu1 %v2678_v25  ;;  %v2741_v4 = vld [vmem:[#allocation5 + $0x20c] ss:$16 sps:$4 sm:$0xff]   ;;  %v107_v5 = vpack.c.bf16 %v100_v2, %v100_v2  ;;  %v2739_v7 = vld [vmem:[#allocation5 + $0x208] ss:$16 sps:$4 sm:$0xff]   ;;  %v2744_v8 = vld [vmem:[#allocation5 + $0x224] ss:$16 sps:$4 sm:$0xff]  }
  0x72   :  { %v2747_v9 = vld [vmem:[#allocation5 + $0x22c] ss:$16 sps:$4 sm:$0xff]   ;;  %v2742_v10 = vld [vmem:[#allocation5 + $0x220] ss:$16 sps:$4 sm:$0xff]   ;;  %v2745_v11 = vld [vmem:[#allocation5 + $0x228] ss:$16 sps:$4 sm:$0xff]  }
  0x73   :  { %v2750_v12 = vld [vmem:[#allocation5 + $0x244] ss:$16 sps:$4 sm:$0xff]   ;;  %v2753_v13 = vld [vmem:[#allocation5 + $0x24c] ss:$16 sps:$4 sm:$0xff]   ;;  %v2748_v14 = vld [vmem:[#allocation5 + $0x240] ss:$16 sps:$4 sm:$0xff]  }
  0x74   :  { %1329 = vmatpush1.bf16.msra.mxu0 %v2680_v26  ;;  %1493 = vmatpush1.bf16.msra.mxu1 %v2681_v27  ;;  %v2751_v15 = vld [vmem:[#allocation5 + $0x248] ss:$16 sps:$4 sm:$0xff]   ;;  %v2756_v16 = vld [vmem:[#allocation5 + $0x264] ss:$16 sps:$4 sm:$0xff]   ;;  %v2759_v17 = vld [vmem:[#allocation5 + $0x26c] ss:$16 sps:$4 sm:$0xff]  }
  0x75   :  { %1330 = vmatprep.subr.bf16.mxu0 %v2682_v28  ;;  %1494 = vmatprep.subr.bf16.mxu1 %v2684_v29  ;;  %v2754_v18 = vld [vmem:[#allocation5 + $0x260] ss:$16 sps:$4 sm:$0xff]   ;;  %v2757_v19 = vld [vmem:[#allocation5 + $0x268] ss:$16 sps:$4 sm:$0xff]   ;;  %v2762_v20 = vld [vmem:[#allocation5 + $0x284] ss:$16 sps:$4 sm:$0xff]  }
  0x76   :  { %v2765_v21 = vld [vmem:[#allocation5 + $0x28c] ss:$16 sps:$4 sm:$0xff]   ;;  %v2760_v22 = vld [vmem:[#allocation5 + $0x280] ss:$16 sps:$4 sm:$0xff]   ;;  %v2763_v23 = vld [vmem:[#allocation5 + $0x288] ss:$16 sps:$4 sm:$0xff]  }
  0x77   :  { %v2768_v24 = vld [vmem:[#allocation5 + $0x2a4] ss:$16 sps:$4 sm:$0xff]   ;;  %v2771_v25 = vld [vmem:[#allocation5 + $0x2ac] ss:$16 sps:$4 sm:$0xff]   ;;  %v2766_v26 = vld [vmem:[#allocation5 + $0x2a0] ss:$16 sps:$4 sm:$0xff]  }
  0x78   :  { %1331 = vmatpush1.bf16.msra.mxu0 %v2686_v30  ;;  %1495 = vmatpush1.bf16.msra.mxu1 %v2687_v31  ;;  %v2769_v27 = vld [vmem:[#allocation5 + $0x2a8] ss:$16 sps:$4 sm:$0xff]   ;;  %v2774_v28 = vld [vmem:[#allocation5 + $0x2c4] ss:$16 sps:$4 sm:$0xff]   ;;  %v2777_v29 = vld [vmem:[#allocation5 + $0x2cc] ss:$16 sps:$4 sm:$0xff]  }
  0x79   :  { %1332 = vmatprep.subr.bf16.mxu0 %v2688_v32  ;;  %1496 = vmatprep.subr.bf16.mxu1 %v2690_v33  ;;  %v103_v30 = vld [vmem:[#allocation2 + $0x18] sm:$0xff]  ;;  %v2775_v33 = vld [vmem:[#allocation5 + $0x2c8] ss:$16 sps:$4 sm:$0xff]  }
  0x7a   :  { %v2772_v31 = vld [vmem:[#allocation5 + $0x2c0] ss:$16 sps:$4 sm:$0xff]   ;;  %v110_v32 = vpack.c.bf16 %v103_v30, %v103_v30  ;;  %v2798_v46 = vld [vmem:[#allocation5 + $0x344] ss:$16 sps:$4 sm:$0xff]  }
  0x7b   :  { %v2796_v48 = vld [vmem:[#allocation5 + $0x340] ss:$16 sps:$4 sm:$0xff]   ;;  %v2828_v2 = vld [vmem:[#allocation5 + $0x3e4] ss:$16 sps:$4 sm:$0xff]  }
  0x7c   :  { %1333 = vmatpush1.bf16.msra.mxu0 %v2692_v34  ;;  %1497 = vmatpush1.bf16.msra.mxu1 %v2693_v35  ;;  %v2780_v34 = vld [vmem:[#allocation5 + $0x2e4] ss:$16 sps:$4 sm:$0xff]   ;;  %v2783_v35 = vld [vmem:[#allocation5 + $0x2ec] ss:$16 sps:$4 sm:$0xff]  }
  0x7d   :  { %1334 = vmatprep.subr.bf16.mxu0 %v2694_v36  ;;  %1498 = vmatprep.subr.bf16.mxu1 %v2696_v37  ;;  %v2778_v36 = vld [vmem:[#allocation5 + $0x2e0] ss:$16 sps:$4 sm:$0xff]   ;;  %v2781_v37 = vld [vmem:[#allocation5 + $0x2e8] ss:$16 sps:$4 sm:$0xff]   ;;  %v2864_v30 = vld [vmem:[#allocation5 + $0x4a4] ss:$16 sps:$4 sm:$0xff]  }
  0x80   :  { %1335 = vmatpush1.bf16.msra.mxu0 %v2698_v38  ;;  %1499 = vmatpush1.bf16.msra.mxu1 %v2699_v39  ;;  %v2786_v38 = vld [vmem:[#allocation5 + $0x304] ss:$16 sps:$4 sm:$0xff]   ;;  %v2789_v39 = vld [vmem:[#allocation5 + $0x30c] ss:$16 sps:$4 sm:$0xff]  }
  0x81   :  { %1336 = vmatprep.subr.bf16.mxu0 %v2700_v40  ;;  %1500 = vmatprep.subr.bf16.mxu1 %v2702_v41  ;;  %v2784_v40 = vld [vmem:[#allocation5 + $0x300] ss:$16 sps:$4 sm:$0xff]   ;;  %v2787_v41 = vld [vmem:[#allocation5 + $0x308] ss:$16 sps:$4 sm:$0xff]  }
  0x84   :  { %1337 = vmatpush1.bf16.msra.mxu0 %v2704_v42  ;;  %1501 = vmatpush1.bf16.msra.mxu1 %v2705_v43  ;;  %v2792_v42 = vld [vmem:[#allocation5 + $0x324] ss:$16 sps:$4 sm:$0xff]   ;;  %v2795_v43 = vld [vmem:[#allocation5 + $0x32c] ss:$16 sps:$4 sm:$0xff]  }
  0x85   :  { %1338 = vmatprep.subr.bf16.mxu0 %v2706_v44  ;;  %1502 = vmatprep.subr.bf16.mxu1 %v2708_v45  ;;  %v2790_v44 = vld [vmem:[#allocation5 + $0x320] ss:$16 sps:$4 sm:$0xff]   ;;  %v2793_v45 = vld [vmem:[#allocation5 + $0x328] ss:$16 sps:$4 sm:$0xff]  }
  0x88   :  { %1339 = vmatpush1.bf16.msra.mxu0 %v2710_v47  ;;  %1503 = vmatpush1.bf16.msra.mxu1 %v2711_v49  ;;  %v2801_v47 = vld [vmem:[#allocation5 + $0x34c] ss:$16 sps:$4 sm:$0xff]   ;;  %v2799_v49 = vld [vmem:[#allocation5 + $0x348] ss:$16 sps:$4 sm:$0xff]  }
  0x89   :  { %1340 = vmatprep.subr.bf16.mxu0 %v2712_v50  ;;  %1504 = vmatprep.subr.bf16.mxu1 %v2714_v51  ;;  %v2804_v50 = vld [vmem:[#allocation5 + $0x364] ss:$16 sps:$4 sm:$0xff]   ;;  %v2807_v51 = vld [vmem:[#allocation5 + $0x36c] ss:$16 sps:$4 sm:$0xff]  }
  0x8c   :  { %1341 = vmatpush1.bf16.msra.mxu0 %v2716_v52  ;;  %1505 = vmatpush1.bf16.msra.mxu1 %v2717_v53  ;;  %v2802_v52 = vld [vmem:[#allocation5 + $0x360] ss:$16 sps:$4 sm:$0xff]   ;;  %v2805_v53 = vld [vmem:[#allocation5 + $0x368] ss:$16 sps:$4 sm:$0xff]  }
  0x8d   :  { %1342 = vmatprep.subr.bf16.mxu0 %v2718_v54  ;;  %1506 = vmatprep.subr.bf16.mxu1 %v2720_v55  ;;  %v2810_v54 = vld [vmem:[#allocation5 + $0x384] ss:$16 sps:$4 sm:$0xff]   ;;  %v2813_v55 = vld [vmem:[#allocation5 + $0x38c] ss:$16 sps:$4 sm:$0xff]  }
  0x90   :  { %1343 = vmatpush1.bf16.msra.mxu0 %v2722_v56  ;;  %1507 = vmatpush1.bf16.msra.mxu1 %v2723_v57  ;;  %v2808_v56 = vld [vmem:[#allocation5 + $0x380] ss:$16 sps:$4 sm:$0xff]   ;;  %v2811_v57 = vld [vmem:[#allocation5 + $0x388] ss:$16 sps:$4 sm:$0xff]  }
  0x91   :  { %1344 = vmatprep.subr.bf16.mxu0 %v2724_v58  ;;  %1508 = vmatprep.subr.bf16.mxu1 %v2726_v59  ;;  %v2816_v58 = vld [vmem:[#allocation5 + $0x3a4] ss:$16 sps:$4 sm:$0xff]   ;;  %v2819_v59 = vld [vmem:[#allocation5 + $0x3ac] ss:$16 sps:$4 sm:$0xff]  }
  0x94   :  { %1345 = vmatpush1.bf16.msra.mxu0 %v2728_v60  ;;  %1509 = vmatpush1.bf16.msra.mxu1 %v2729_v61  ;;  %v2814_v60 = vld [vmem:[#allocation5 + $0x3a0] ss:$16 sps:$4 sm:$0xff]   ;;  %v2817_v61 = vld [vmem:[#allocation5 + $0x3a8] ss:$16 sps:$4 sm:$0xff]  }
  0x95   :  { %1346 = vmatprep.subr.bf16.mxu0 %v2730_v62  ;;  %1510 = vmatprep.subr.bf16.mxu1 %v2732_v63  ;;  %v2822_v62 = vld [vmem:[#allocation5 + $0x3c4] ss:$16 sps:$4 sm:$0xff]   ;;  %v2825_v63 = vld [vmem:[#allocation5 + $0x3cc] ss:$16 sps:$4 sm:$0xff]  }
  0x98   :  { %1347 = vmatpush1.bf16.msra.mxu0 %v2734_v0  ;;  %1511 = vmatpush1.bf16.msra.mxu1 %v2735_v1  ;;  %v2820_v0 = vld [vmem:[#allocation5 + $0x3c0] ss:$16 sps:$4 sm:$0xff]   ;;  %v2823_v1 = vld [vmem:[#allocation5 + $0x3c8] ss:$16 sps:$4 sm:$0xff]  }
  0x99   :  { %1357 = vmatprep.subr.bf16.mxu0 %v2738_v3  ;;  %1521 = vmatprep.subr.bf16.mxu1 %v2741_v4  ;;  %v2831_v3 = vld [vmem:[#allocation5 + $0x3ec] ss:$16 sps:$4 sm:$0xff]   ;;  %v2826_v4 = vld [vmem:[#allocation5 + $0x3e0] ss:$16 sps:$4 sm:$0xff]  }
  0x9b   :  { %1349 = vmatmul.mubr.bf16.vlgmr.msra.gmra.mrb[0].mxu0 %v107_v5  ;;  %1513 = vmatmul.mubr.bf16.vlgmr.msra.gmra.mrb[0].mxu1 %v107_v5  ;;  %v2829_v5 = vld [vmem:[#allocation5 + $0x3e8] ss:$16 sps:$4 sm:$0xff]  }
  0x9c   :  { %1358 = vmatpush1.bf16.msra.mxu0 %v2736_v6  ;;  %1522 = vmatpush1.bf16.msra.mxu1 %v2739_v7  ;;  %v2834_v6 = vld [vmem:[#allocation5 + $0x404] ss:$16 sps:$4 sm:$0xff]   ;;  %v102_v7 = vld [vmem:[#allocation2 + $0x10] sm:$0xff] }
  0x9d   :  { %1359 = vmatprep.subr.bf16.mxu0 %v2744_v8  ;;  %1523 = vmatprep.subr.bf16.mxu1 %v2747_v9  ;;  %v2837_v8 = vld [vmem:[#allocation5 + $0x40c] ss:$16 sps:$4 sm:$0xff]   ;;  %v2832_v9 = vld [vmem:[#allocation5 + $0x400] ss:$16 sps:$4 sm:$0xff]  }
  0x9e   :  { %1389 = vmatprep.mubr.bf16.mxu0 %v110_v32  ;;  %1553 = vmatprep.mubr.bf16.mxu1 %v110_v32  ;;  %v2862_v32 = vld [vmem:[#allocation5 + $0x4a0] ss:$16 sps:$4 sm:$0xff]  }
  0xa0   :  { %1360 = vmatpush1.bf16.msra.mxu0 %v2742_v10  ;;  %1524 = vmatpush1.bf16.msra.mxu1 %v2745_v11  ;;  %v109_v10 = vpack.c.bf16 %v102_v7, %v102_v7  ;;  %v2835_v11 = vld [vmem:[#allocation5 + $0x408] ss:$16 sps:$4 sm:$0xff]   ;;  %v2927_v7 = vld [vmem:[#allocation5 + $0x5ec] ss:$16 sps:$4 sm:$0xff]  }
  0xa1   :  { %1361 = vmatprep.subr.bf16.mxu0 %v2750_v12  ;;  %1525 = vmatprep.subr.bf16.mxu1 %v2753_v13  ;;  %v2840_v12 = vld [vmem:[#allocation5 + $0x424] ss:$16 sps:$4 sm:$0xff]   ;;  %v2843_v13 = vld [vmem:[#allocation5 + $0x42c] ss:$16 sps:$4 sm:$0xff]  }
  0xa4   :  { %1362 = vmatpush1.bf16.msra.mxu0 %v2748_v14  ;;  %1526 = vmatpush1.bf16.msra.mxu1 %v2751_v15  ;;  %v105_v14 = vld [vmem:[#allocation2 + $0x28] sm:$0xff] }
  0xa5   :  { %1363 = vmatprep.subr.bf16.mxu0 %v2756_v16  ;;  %1527 = vmatprep.subr.bf16.mxu1 %v2759_v17  ;;  %v112_v15 = vpack.c.bf16 %v105_v14, %v105_v14  ;;  %v2838_v16 = vld [vmem:[#allocation5 + $0x420] ss:$16 sps:$4 sm:$0xff]   ;;  %v2841_v17 = vld [vmem:[#allocation5 + $0x428] ss:$16 sps:$4 sm:$0xff]  }
  0xa6   :  { %v2928_v14 = vld [vmem:[#allocation5 + $0x600] ss:$16 sps:$4 sm:$0xff]  }
  0xa8   :  { %1364 = vmatpush1.bf16.msra.mxu0 %v2754_v18  ;;  %1528 = vmatpush1.bf16.msra.mxu1 %v2757_v19  ;;  %v2846_v18 = vld [vmem:[#allocation5 + $0x444] ss:$16 sps:$4 sm:$0xff]   ;;  %v2849_v19 = vld [vmem:[#allocation5 + $0x44c] ss:$16 sps:$4 sm:$0xff]  }
  0xa9   :  { %1365 = vmatprep.subr.bf16.mxu0 %v2762_v20  ;;  %1529 = vmatprep.subr.bf16.mxu1 %v2765_v21  ;;  %v2844_v20 = vld [vmem:[#allocation5 + $0x440] ss:$16 sps:$4 sm:$0xff]   ;;  %v2847_v21 = vld [vmem:[#allocation5 + $0x448] ss:$16 sps:$4 sm:$0xff]  }
  0xac   :  { %1366 = vmatpush1.bf16.msra.mxu0 %v2760_v22  ;;  %1530 = vmatpush1.bf16.msra.mxu1 %v2763_v23  ;;  %v2852_v22 = vld [vmem:[#allocation5 + $0x464] ss:$16 sps:$4 sm:$0xff]   ;;  %v2855_v23 = vld [vmem:[#allocation5 + $0x46c] ss:$16 sps:$4 sm:$0xff]  }
  0xad   :  { %1367 = vmatprep.subr.bf16.mxu0 %v2768_v24  ;;  %1531 = vmatprep.subr.bf16.mxu1 %v2771_v25  ;;  %v2850_v24 = vld [vmem:[#allocation5 + $0x460] ss:$16 sps:$4 sm:$0xff]   ;;  %v2853_v25 = vld [vmem:[#allocation5 + $0x468] ss:$16 sps:$4 sm:$0xff]  }
  0xb0   :  { %1368 = vmatpush1.bf16.msra.mxu0 %v2766_v26  ;;  %1532 = vmatpush1.bf16.msra.mxu1 %v2769_v27  ;;  %v2858_v26 = vld [vmem:[#allocation5 + $0x484] ss:$16 sps:$4 sm:$0xff]   ;;  %v2861_v27 = vld [vmem:[#allocation5 + $0x48c] ss:$16 sps:$4 sm:$0xff]  }
  0xb1   :  { %1369 = vmatprep.subr.bf16.mxu0 %v2774_v28  ;;  %1533 = vmatprep.subr.bf16.mxu1 %v2777_v29  ;;  %v2856_v28 = vld [vmem:[#allocation5 + $0x480] ss:$16 sps:$4 sm:$0xff]   ;;  %v2859_v29 = vld [vmem:[#allocation5 + $0x488] ss:$16 sps:$4 sm:$0xff]  }
  0xb4   :  { %1370 = vmatpush1.bf16.msra.mxu0 %v2772_v31  ;;  %1534 = vmatpush1.bf16.msra.mxu1 %v2775_v33  ;;  %v2867_v31 = vld [vmem:[#allocation5 + $0x4ac] ss:$16 sps:$4 sm:$0xff]   ;;  %v2865_v33 = vld [vmem:[#allocation5 + $0x4a8] ss:$16 sps:$4 sm:$0xff]  }
  0xb5   :  { %1371 = vmatprep.subr.bf16.mxu0 %v2780_v34  ;;  %1535 = vmatprep.subr.bf16.mxu1 %v2783_v35  ;;  %v2870_v34 = vld [vmem:[#allocation5 + $0x4c4] ss:$16 sps:$4 sm:$0xff]   ;;  %v2873_v35 = vld [vmem:[#allocation5 + $0x4cc] ss:$16 sps:$4 sm:$0xff]  }
  0xb8   :  { %1372 = vmatpush1.bf16.msra.mxu0 %v2778_v36  ;;  %1536 = vmatpush1.bf16.msra.mxu1 %v2781_v37  ;;  %v2868_v36 = vld [vmem:[#allocation5 + $0x4c0] ss:$16 sps:$4 sm:$0xff]   ;;  %v2871_v37 = vld [vmem:[#allocation5 + $0x4c8] ss:$16 sps:$4 sm:$0xff]  }
  0xb9   :  { %1373 = vmatprep.subr.bf16.mxu0 %v2786_v38  ;;  %1537 = vmatprep.subr.bf16.mxu1 %v2789_v39  ;;  %v2876_v38 = vld [vmem:[#allocation5 + $0x4e4] ss:$16 sps:$4 sm:$0xff]   ;;  %v2879_v39 = vld [vmem:[#allocation5 + $0x4ec] ss:$16 sps:$4 sm:$0xff]  }
  0xbc   :  { %1374 = vmatpush1.bf16.msra.mxu0 %v2784_v40  ;;  %1538 = vmatpush1.bf16.msra.mxu1 %v2787_v41  ;;  %v2874_v40 = vld [vmem:[#allocation5 + $0x4e0] ss:$16 sps:$4 sm:$0xff]   ;;  %v2877_v41 = vld [vmem:[#allocation5 + $0x4e8] ss:$16 sps:$4 sm:$0xff]  }
  0xbd   :  { %1375 = vmatprep.subr.bf16.mxu0 %v2792_v42  ;;  %1539 = vmatprep.subr.bf16.mxu1 %v2795_v43  ;;  %v2882_v42 = vld [vmem:[#allocation5 + $0x504] ss:$16 sps:$4 sm:$0xff]   ;;  %v2885_v43 = vld [vmem:[#allocation5 + $0x50c] ss:$16 sps:$4 sm:$0xff]  }
  0xc0   :  { %1376 = vmatpush1.bf16.msra.mxu0 %v2790_v44  ;;  %1540 = vmatpush1.bf16.msra.mxu1 %v2793_v45  ;;  %v2880_v44 = vld [vmem:[#allocation5 + $0x500] ss:$16 sps:$4 sm:$0xff]   ;;  %v2883_v45 = vld [vmem:[#allocation5 + $0x508] ss:$16 sps:$4 sm:$0xff]  }
  0xc1   :  { %1377 = vmatprep.subr.bf16.mxu0 %v2798_v46  ;;  %1541 = vmatprep.subr.bf16.mxu1 %v2801_v47  ;;  %v2888_v46 = vld [vmem:[#allocation5 + $0x524] ss:$16 sps:$4 sm:$0xff]   ;;  %v2891_v47 = vld [vmem:[#allocation5 + $0x52c] ss:$16 sps:$4 sm:$0xff]  }
  0xc4   :  { %1378 = vmatpush1.bf16.msra.mxu0 %v2796_v48  ;;  %1542 = vmatpush1.bf16.msra.mxu1 %v2799_v49  ;;  %v2886_v48 = vld [vmem:[#allocation5 + $0x520] ss:$16 sps:$4 sm:$0xff]   ;;  %v2889_v49 = vld [vmem:[#allocation5 + $0x528] ss:$16 sps:$4 sm:$0xff]  }
  0xc5   :  { %1379 = vmatprep.subr.bf16.mxu0 %v2804_v50  ;;  %1543 = vmatprep.subr.bf16.mxu1 %v2807_v51  ;;  %v2894_v50 = vld [vmem:[#allocation5 + $0x544] ss:$16 sps:$4 sm:$0xff]   ;;  %v2897_v51 = vld [vmem:[#allocation5 + $0x54c] ss:$16 sps:$4 sm:$0xff]  }
  0xc8   :  { %1380 = vmatpush1.bf16.msra.mxu0 %v2802_v52  ;;  %1544 = vmatpush1.bf16.msra.mxu1 %v2805_v53  ;;  %v2892_v52 = vld [vmem:[#allocation5 + $0x540] ss:$16 sps:$4 sm:$0xff]   ;;  %v2895_v53 = vld [vmem:[#allocation5 + $0x548] ss:$16 sps:$4 sm:$0xff]  }
  0xc9   :  { %1381 = vmatprep.subr.bf16.mxu0 %v2810_v54  ;;  %1545 = vmatprep.subr.bf16.mxu1 %v2813_v55  ;;  %v2900_v54 = vld [vmem:[#allocation5 + $0x564] ss:$16 sps:$4 sm:$0xff]   ;;  %v2903_v55 = vld [vmem:[#allocation5 + $0x56c] ss:$16 sps:$4 sm:$0xff]  }
  0xcc   :  { %1382 = vmatpush1.bf16.msra.mxu0 %v2808_v56  ;;  %1546 = vmatpush1.bf16.msra.mxu1 %v2811_v57  ;;  %v2898_v56 = vld [vmem:[#allocation5 + $0x560] ss:$16 sps:$4 sm:$0xff]   ;;  %v2901_v57 = vld [vmem:[#allocation5 + $0x568] ss:$16 sps:$4 sm:$0xff]  }
  0xcd   :  { %1383 = vmatprep.subr.bf16.mxu0 %v2816_v58  ;;  %1547 = vmatprep.subr.bf16.mxu1 %v2819_v59  ;;  %v2906_v58 = vld [vmem:[#allocation5 + $0x584] ss:$16 sps:$4 sm:$0xff]   ;;  %v2909_v59 = vld [vmem:[#allocation5 + $0x58c] ss:$16 sps:$4 sm:$0xff]  }
  0xd0   :  { %1384 = vmatpush1.bf16.msra.mxu0 %v2814_v60  ;;  %1548 = vmatpush1.bf16.msra.mxu1 %v2817_v61  ;;  %v2904_v60 = vld [vmem:[#allocation5 + $0x580] ss:$16 sps:$4 sm:$0xff]   ;;  %v2907_v61 = vld [vmem:[#allocation5 + $0x588] ss:$16 sps:$4 sm:$0xff]  }
  0xd1   :  { %1385 = vmatprep.subr.bf16.mxu0 %v2822_v62  ;;  %1549 = vmatprep.subr.bf16.mxu1 %v2825_v63  ;;  %v2912_v62 = vld [vmem:[#allocation5 + $0x5a4] ss:$16 sps:$4 sm:$0xff]   ;;  %v2915_v63 = vld [vmem:[#allocation5 + $0x5ac] ss:$16 sps:$4 sm:$0xff]  }
  0xd4   :  { %1386 = vmatpush1.bf16.msra.mxu0 %v2820_v0  ;;  %1550 = vmatpush1.bf16.msra.mxu1 %v2823_v1  ;;  %v2910_v0 = vld [vmem:[#allocation5 + $0x5a0] ss:$16 sps:$4 sm:$0xff]   ;;  %v2913_v1 = vld [vmem:[#allocation5 + $0x5a8] ss:$16 sps:$4 sm:$0xff]  }
  0xd5   :  { %1387 = vmatprep.subr.bf16.mxu0 %v2828_v2  ;;  %1551 = vmatprep.subr.bf16.mxu1 %v2831_v3  ;;  %v2918_v2 = vld [vmem:[#allocation5 + $0x5c4] ss:$16 sps:$4 sm:$0xff]   ;;  %v2921_v3 = vld [vmem:[#allocation5 + $0x5cc] ss:$16 sps:$4 sm:$0xff]  }
  0xd8   :  { %1388 = vmatpush1.bf16.msra.mxu0 %v2826_v4  ;;  %1552 = vmatpush1.bf16.msra.mxu1 %v2829_v5  ;;  %v2916_v4 = vld [vmem:[#allocation5 + $0x5c0] ss:$16 sps:$4 sm:$0xff]   ;;  %v2919_v5 = vld [vmem:[#allocation5 + $0x5c8] ss:$16 sps:$4 sm:$0xff]  }
  0xd9   :  { %1398 = vmatprep.subr.bf16.mxu0 %v2834_v6  ;;  %1562 = vmatprep.subr.bf16.mxu1 %v2837_v8  ;;  %v2924_v6 = vld [vmem:[#allocation5 + $0x5e4] ss:$16 sps:$4 sm:$0xff]   ;;  %v2922_v8 = vld [vmem:[#allocation5 + $0x5e0] ss:$16 sps:$4 sm:$0xff]  }
  0xdb   :  { %1390 = vmatmul.mubr.bf16.vlgmr.msra.gmra.mrb[0].mxu0 %v109_v10  ;;  %1554 = vmatmul.mubr.bf16.vlgmr.msra.gmra.mrb[0].mxu1 %v109_v10  ;;  %v104_v10 = vld [vmem:[#allocation2 + $0x20] sm:$0xff] }
  0xdc   :  { %1399 = vmatpush1.bf16.msra.mxu0 %v2832_v9  ;;  %1563 = vmatpush1.bf16.msra.mxu1 %v2835_v11  ;;  %v2925_v9 = vld [vmem:[#allocation5 + $0x5e8] ss:$16 sps:$4 sm:$0xff]   ;;  %v2930_v11 = vld [vmem:[#allocation5 + $0x604] ss:$16 sps:$4 sm:$0xff]  }
  0xdd   :  { %1400 = vmatprep.subr.bf16.mxu0 %v2840_v12  ;;  %1564 = vmatprep.subr.bf16.mxu1 %v2843_v13  ;;  %v2933_v12 = vld [vmem:[#allocation5 + $0x60c] ss:$16 sps:$4 sm:$0xff]   ;;  %v111_v13 = vpack.c.bf16 %v104_v10, %v104_v10 }
  0xde   :  { %1430 = vmatprep.mubr.bf16.mxu0 %v112_v15  ;;  %1594 = vmatprep.mubr.bf16.mxu1 %v112_v15  ;;  %v2931_v15 = vld [vmem:[#allocation5 + $0x608] ss:$16 sps:$4 sm:$0xff]  }
  0xe0   :  { %1401 = vmatpush1.bf16.msra.mxu0 %v2838_v16  ;;  %1565 = vmatpush1.bf16.msra.mxu1 %v2841_v17  ;;  %v2934_v16 = vld [vmem:[#allocation7 + $0x40] sm:$0xff]  }
  0xe1   :  { %1402 = vmatprep.subr.bf16.mxu0 %v2846_v18  ;;  %1566 = vmatprep.subr.bf16.mxu1 %v2849_v19  ;;  %v2935_v17 = vld [vmem:[#allocation7 + $0xc0] sm:$0xff]   ;;  %v3135_v18 = vmov 0   ;;  %v106_v19 = vld [vmem:[#allocation2 + $0x30] sm:$0xff] }
  0xe4   :  { %1403 = vmatpush1.bf16.msra.mxu0 %v2844_v20  ;;  %1567 = vmatpush1.bf16.msra.mxu1 %v2847_v21  ;;  %v113_v20 = vpack.c.bf16 %v106_v19, %v106_v19  ;;  %v2936_v21 = vld [vmem:[#allocation7] sm:$0xff]  }
  0xe5   :  { %1404 = vmatprep.subr.bf16.mxu0 %v2852_v22  ;;  %1568 = vmatprep.subr.bf16.mxu1 %v2855_v23  ;;  %v2937_v22 = vld [vmem:[#allocation7 + $0x80] sm:$0xff]   ;;  %v2938_v23 = vld [vmem:[#allocation7 + $0x48] sm:$0xff]  }
  0xe8   :  { %1405 = vmatpush1.bf16.msra.mxu0 %v2850_v24  ;;  %1569 = vmatpush1.bf16.msra.mxu1 %v2853_v25  ;;  %v2939_v24 = vld [vmem:[#allocation7 + $0xc8] sm:$0xff]  }
  0xe9   :  { %1406 = vmatprep.subr.bf16.mxu0 %v2858_v26  ;;  %1570 = vmatprep.subr.bf16.mxu1 %v2861_v27  ;;  %v2940_v25 = vld [vmem:[#allocation7 + $0x8] sm:$0xff]   ;;  %v2942_v27 = vld [vmem:[#allocation7 + $0x50] sm:$0xff]  }
  0xea   :  { %v2941_v26 = vld [vmem:[#allocation7 + $0x88] sm:$0xff]  }
  0xec   :  { %1407 = vmatpush1.bf16.msra.mxu0 %v2856_v28  ;;  %1571 = vmatpush1.bf16.msra.mxu1 %v2859_v29  ;;  %v2943_v28 = vld [vmem:[#allocation7 + $0xd0] sm:$0xff]  }
  0xed   :  { %1408 = vmatprep.subr.bf16.mxu0 %v2864_v30  ;;  %1572 = vmatprep.subr.bf16.mxu1 %v2867_v31  ;;  %v2944_v29 = vld [vmem:[#allocation7 + $0x10] sm:$0xff]   ;;  %v2946_v31 = vld [vmem:[#allocation7 + $0x58] sm:$0xff]  }
  0xee   :  { %v2945_v30 = vld [vmem:[#allocation7 + $0x90] sm:$0xff]  }
  0xf0   :  { %1409 = vmatpush1.bf16.msra.mxu0 %v2862_v32  ;;  %1573 = vmatpush1.bf16.msra.mxu1 %v2865_v33  ;;  %v2947_v32 = vld [vmem:[#allocation7 + $0xd8] sm:$0xff]  }
  0xf1   :  { %1410 = vmatprep.subr.bf16.mxu0 %v2870_v34  ;;  %1574 = vmatprep.subr.bf16.mxu1 %v2873_v35  ;;  %v2948_v33 = vld [vmem:[#allocation7 + $0x18] sm:$0xff]   ;;  %v2950_v35 = vld [vmem:[#allocation7 + $0x60] sm:$0xff]  }
  0xf2   :  { %v2949_v34 = vld [vmem:[#allocation7 + $0x98] sm:$0xff]  }
  0xf4   :  { %1411 = vmatpush1.bf16.msra.mxu0 %v2868_v36  ;;  %1575 = vmatpush1.bf16.msra.mxu1 %v2871_v37  ;;  %v2951_v36 = vld [vmem:[#allocation7 + $0xe0] sm:$0xff]  }
  0xf5   :  { %1412 = vmatprep.subr.bf16.mxu0 %v2876_v38  ;;  %1576 = vmatprep.subr.bf16.mxu1 %v2879_v39  ;;  %v2952_v37 = vld [vmem:[#allocation7 + $0x20] sm:$0xff]   ;;  %v2954_v39 = vld [vmem:[#allocation7 + $0x68] sm:$0xff]  }
  0xf6   :  { %v2953_v38 = vld [vmem:[#allocation7 + $0xa0] sm:$0xff]  }
  0xf8   :  { %1413 = vmatpush1.bf16.msra.mxu0 %v2874_v40  ;;  %1577 = vmatpush1.bf16.msra.mxu1 %v2877_v41  ;;  %v2955_v40 = vld [vmem:[#allocation7 + $0xe8] sm:$0xff]  }
  0xf9   :  { %1414 = vmatprep.subr.bf16.mxu0 %v2882_v42  ;;  %1578 = vmatprep.subr.bf16.mxu1 %v2885_v43  ;;  %v2956_v41 = vld [vmem:[#allocation7 + $0x28] sm:$0xff]   ;;  %v2958_v43 = vld [vmem:[#allocation7 + $0x70] sm:$0xff]  }
  0xfa   :  { %v2957_v42 = vld [vmem:[#allocation7 + $0xa8] sm:$0xff]  }
  0xfc   :  { %1415 = vmatpush1.bf16.msra.mxu0 %v2880_v44  ;;  %1579 = vmatpush1.bf16.msra.mxu1 %v2883_v45  ;;  %v2959_v44 = vld [vmem:[#allocation7 + $0xf0] sm:$0xff]  }
  0xfd   :  { %1416 = vmatprep.subr.bf16.mxu0 %v2888_v46  ;;  %1580 = vmatprep.subr.bf16.mxu1 %v2891_v47  ;;  %v2960_v45 = vld [vmem:[#allocation7 + $0x30] sm:$0xff]   ;;  %v2962_v47 = vld [vmem:[#allocation7 + $0x78] sm:$0xff]  }
  0xfe   :  { %v2961_v46 = vld [vmem:[#allocation7 + $0xb0] sm:$0xff]  }
 0x100   :  { %1417 = vmatpush1.bf16.msra.mxu0 %v2886_v48  ;;  %1581 = vmatpush1.bf16.msra.mxu1 %v2889_v49  ;;  %v2963_v48 = vld [vmem:[#allocation7 + $0xf8] sm:$0xff]  }
 0x101   :  { %1418 = vmatprep.subr.bf16.mxu0 %v2894_v50  ;;  %1582 = vmatprep.subr.bf16.mxu1 %v2897_v51  ;;  %v2964_v49 = vld [vmem:[#allocation7 + $0x38] sm:$0xff]   ;;  %v3136_v51 = vmov 0.0  }
 0x102   :  { %v2965_v50 = vld [vmem:[#allocation7 + $0xb8] sm:$0xff]  }
 0x104   :  { %1419 = vmatpush1.bf16.msra.mxu0 %v2892_v52  ;;  %1583 = vmatpush1.bf16.msra.mxu1 %v2895_v53  ;;  %v312_v52 = vlaneseq }
 0x105   :  { %1420 = vmatprep.subr.bf16.mxu0 %v2900_v54  ;;  %1584 = vmatprep.subr.bf16.mxu1 %v2903_v55 }
 0x106   :  { %v313_v53 = vshrl.u32 %v312_v52, 7 }
 0x108   :  { %1421 = vmatpush1.bf16.msra.mxu0 %v2898_v56  ;;  %1585 = vmatpush1.bf16.msra.mxu1 %v2901_v57  ;;  %v314_v54 = vsub.s32 0, %v313_v53  ;;  %v322_v55 = vsub.s32 2, %v313_v53  ;;  %v310_v56 = vld [vmem:[%s3302_s2] sm:$0xf]  ;;  %v318_v57 = vsub.s32 1, %v313_v53 }
 0x109   :  { %1422 = vmatprep.subr.bf16.mxu0 %v2906_v58  ;;  %1586 = vmatprep.subr.bf16.mxu1 %v2909_v59  ;;  %v326_v58 = vsub.s32 3, %v313_v53 }
 0x10a   :  { %v315_v59 = vrot.slane %v310_v56, %v314_v54 }
 0x10c   :  { %1423 = vmatpush1.bf16.msra.mxu0 %v2904_v60  ;;  %1587 = vmatpush1.bf16.msra.mxu1 %v2907_v61  ;;  %v323_v60 = vrot.slane %v310_v56, %v322_v55  ;;  %v319_v61 = vrot.slane %v310_v56, %v318_v57 }
 0x10d   :  { %1424 = vmatprep.subr.bf16.mxu0 %v2912_v62  ;;  %1588 = vmatprep.subr.bf16.mxu1 %v2915_v63  ;;  %v327_v62 = vrot.slane %v310_v56, %v326_v58 }
 0x110   :  { %1425 = vmatpush1.bf16.msra.mxu0 %v2910_v0  ;;  %1589 = vmatpush1.bf16.msra.mxu1 %v2913_v1 }
 0x111   :  { %1426 = vmatprep.subr.bf16.mxu0 %v2918_v2  ;;  %1590 = vmatprep.subr.bf16.mxu1 %v2921_v3 }
 0x114   :  { %1427 = vmatpush1.bf16.msra.mxu0 %v2916_v4  ;;  %1591 = vmatpush1.bf16.msra.mxu1 %v2919_v5 }
 0x115   :  { %1428 = vmatprep.subr.bf16.mxu0 %v2924_v6  ;;  %1592 = vmatprep.subr.bf16.mxu1 %v2927_v7 }
 0x118   :  { %1429 = vmatpush1.bf16.msra.mxu0 %v2922_v8  ;;  %1593 = vmatpush1.bf16.msra.mxu1 %v2925_v9 }
 0x119   :  { %1439 = vmatprep.subr.bf16.mxu0 %v2930_v11  ;;  %1603 = vmatprep.subr.bf16.mxu1 %v2933_v12 }
 0x11b   :  { %1431 = vmatmul.mubr.bf16.vlgmr.msra.gmra.mrb[0].mxu0 %v111_v13  ;;  %1595 = vmatmul.mubr.bf16.vlgmr.msra.gmra.mrb[0].mxu1 %v111_v13 }
 0x11c   :  { %1440 = vmatpush1.bf16.msra.mxu0 %v2928_v14  ;;  %1604 = vmatpush1.bf16.msra.mxu1 %v2931_v15 }
 0x11d   :  { %1471 = vmatprep.mubr.bf16.mxu0 %v3135_v18  ;;  %1635 = vmatprep.mubr.bf16.mxu1 %v3135_v18 }
 0x11e   :  { %2497 = vmatprep.subr.bf16.mxu0 %v2934_v16  ;;  %2519 = vmatprep.subr.bf16.mxu1 %v2935_v17  ;;  %v2966_v17 = vld [vmem:[#allocation8] sm:$0xff]  }
 0x127   :  { %2444 = vmatmul.mubr.msk.bf16.vlgmr.msra.gmra.mrb[0].mxu0 %vm1312_vm0, %v113_v20  ;;  %2445 = vmatmul.mubr.msk.bf16.vlgmr.msra.gmra.mrb[0].mxu1 %vm1312_vm0, %v113_v20  ;;  %v2967_v20 = vld [vmem:[#allocation8 + $0x8] sm:$0xff]  }
 0x128   :  { %2498 = vmatpush3.bf16.msra.mxu0 %v2936_v21  ;;  %2520 = vmatpush3.bf16.msra.mxu1 %v2937_v22  ;;  %v2968_v21 = vld [vmem:[#allocation8 + $0x10] sm:$0xff]   ;;  %v2969_v22 = vld [vmem:[#allocation8 + $0x18] sm:$0xff]  }
 0x129   :  { %2499 = vmatprep.subr.bf16.mxu0 %v2938_v23  ;;  %2521 = vmatprep.subr.bf16.mxu1 %v2939_v24  ;;  %v2970_v23 = vld [vmem:[#allocation8 + $0x20] sm:$0xff]   ;;  %v2971_v24 = vld [vmem:[#allocation8 + $0x28] sm:$0xff]  }
 0x12c   :  { %2500 = vmatpush3.bf16.msra.mxu0 %v2940_v25  ;;  %2522 = vmatpush3.bf16.msra.mxu1 %v2941_v26  ;;  %v2972_v25 = vld [vmem:[#allocation8 + $0x30] sm:$0xff]   ;;  %v2973_v26 = vld [vmem:[#allocation8 + $0x38] sm:$0xff]  }
 0x12d   :  { %2501 = vmatprep.subr.bf16.mxu0 %v2942_v27  ;;  %2523 = vmatprep.subr.bf16.mxu1 %v2943_v28  ;;  %v2974_v27 = vld [vmem:[#allocation10] sm:$0xff]   ;;  %v2975_v28 = vld [vmem:[#allocation10 + $0x8] sm:$0xff]  }
 0x130   :  { %2502 = vmatpush3.bf16.msra.mxu0 %v2944_v29  ;;  %2524 = vmatpush3.bf16.msra.mxu1 %v2945_v30  ;;  %v2976_v29 = vld [vmem:[#allocation10 + $0x10] sm:$0xff]   ;;  %v2977_v30 = vld [vmem:[#allocation10 + $0x18] sm:$0xff]  }
 0x131   :  { %2503 = vmatprep.subr.bf16.mxu0 %v2946_v31  ;;  %2525 = vmatprep.subr.bf16.mxu1 %v2947_v32  ;;  %v2978_v31 = vld [vmem:[#allocation10 + $0x20] sm:$0xff]   ;;  %v2979_v32 = vld [vmem:[#allocation10 + $0x28] sm:$0xff]  }
 0x134   :  { %2504 = vmatpush3.bf16.msra.mxu0 %v2948_v33  ;;  %2526 = vmatpush3.bf16.msra.mxu1 %v2949_v34 }
 0x135   :  { %2505 = vmatprep.subr.bf16.mxu0 %v2950_v35  ;;  %2527 = vmatprep.subr.bf16.mxu1 %v2951_v36  ;;  %v2446_v35 = vld [vmem:[%s3304_s4] ss:$0 sm:$0xff] }
 0x138   :  { %2506 = vmatpush3.bf16.msra.mxu0 %v2952_v37  ;;  %2528 = vmatpush3.bf16.msra.mxu1 %v2953_v38 }
 0x139   :  { %2507 = vmatprep.subr.bf16.mxu0 %v2954_v39  ;;  %2529 = vmatprep.subr.bf16.mxu1 %v2955_v40 }
 0x13c   :  { %2508 = vmatpush3.bf16.msra.mxu0 %v2956_v41  ;;  %2530 = vmatpush3.bf16.msra.mxu1 %v2957_v42 }
 0x13d   :  { %2509 = vmatprep.subr.bf16.mxu0 %v2958_v43  ;;  %2531 = vmatprep.subr.bf16.mxu1 %v2959_v44 }
 0x140   :  { %2510 = vmatpush3.bf16.msra.mxu0 %v2960_v45  ;;  %2532 = vmatpush3.bf16.msra.mxu1 %v2961_v46 }
 0x141   :  { %2511 = vmatprep.subr.bf16.mxu0 %v2962_v47  ;;  %2533 = vmatprep.subr.bf16.mxu1 %v2963_v48  ;;  %v2980_v48 = vld [vmem:[#allocation10 + $0x30] sm:$0xff]  }
 0x144   :  { %2512 = vmatpush3.bf16.msra.mxu0 %v2964_v49  ;;  %2534 = vmatpush3.bf16.msra.mxu1 %v2965_v50  ;;  %v2981_v49 = vld [vmem:[#allocation10 + $0x38] sm:$0xff]   ;;  %v2479_v50 = vld [vmem:[%s3306_s6] ss:$0 sm:$0xff]  ;;  %s3138_s6 = smov [#allocation11]  }
 0x145   :  { %2559 = vmatprep.subr.bf16.mxu0 %v3136_v51  ;;  %2579 = vmatprep.subr.bf16.mxu1 %v3136_v51  ;;  %s2237_s11 = sshll.u32 %s3138_s6, 4  ;;  %s2238_s11 = int_to_ptr.vmem [resolvable:$true] %s2237_s11 }
 0x146   :  { %p3101_p13 = scmp.lt.s32.totalorder %s2238_s11, %s2238_s11 }
 0x1fa   :  { %v1473_v63 = vpop.f32.mrb[0].mxu0  ;;  %v1637_v0 = vpop.f32.mrb[0].mxu1 }
 0x1fb   :  { %v2599_v1 = vadd.f32 %v1473_v63, %v315_v59  ;;  %v2601_v2 = vadd.f32 %v1637_v0, %v323_v60  ;;  %v1475_v3 = vpop.f32.mrb[1].mxu0  ;;  %v1639_v4 = vpop.f32.mrb[1].mxu1  ;;  %v2488_v59 = vld [vmem:[%s3308_s8] ss:$0 sm:$0xff]  ;;  %s3096_s8 = scalar_lea.vmem %s2238_s11, 128 }
 0x1fc   :  { %v2600_v5 = vadd.f32 %v1475_v3, %v319_v61  ;;  %v2602_v6 = vadd.f32 %v1639_v4, %v327_v62  ;;  %v1477_v7 = vpop.f32.mrb[2].mxu0  ;;  %v1641_v8 = vpop.f32.mrb[2].mxu1  ;;  %p3097_p12 = scmp.ne.s32.totalorder %s2238_s11, %s3096_s8  ;;  %p3102_p0 = scmp.lt.s32.totalorder %s3096_s8, %s3096_s8 }
 0x1fd   :  { %v1644_v9 = vmax.f32 %v2599_v1, 0.0  ;;  %v1646_v10 = vmax.f32 %v2601_v2, 0.0  ;;  %v1478_v11 = vpop.f32.mrb[3].mxu0  ;;  %v1642_v12 = vpop.f32.mrb[3].mxu1 }
 0x1fe   :  { %v1645_v13 = vmax.f32 %v2600_v5, 0.0  ;;  %v1647_v14 = vmax.f32 %v2602_v6, 0.0  ;;  %p3103_p1 = por %p3102_p0, %p3101_p13 }
 0x1ff   :  { %v1648_v18 = vpack.c.bf16 %v1644_v9, %v1644_v9  ;;  %v1650_v19 = vpack.c.bf16 %v1646_v10, %v1646_v10 }
 0x200   :  { %v1649_v15 = vpack.c.bf16 %v1645_v13, %v1645_v13  ;;  %v1651_v16 = vpack.c.bf16 %v1647_v14, %v1647_v14  ;;  %p3104_p2 = pnand %p3103_p1, %p3097_p12 }
 0x202   :  { %1947 = vmatprep.mubr.bf16.mxu0 %v1649_v15  ;;  %1987 = vmatprep.mubr.bf16.mxu1 %v1651_v16 }
 0x203   :  { %1948 = vmatmul.mubr.bf16.vlgmr.msra.gmra.mrb[4].mxu0 %v1648_v18  ;;  %1988 = vmatmul.mubr.bf16.vlgmr.msra.gmra.mrb[4].mxu1 %v1650_v19 }
 0x204   :  { %2560 = vmatpush3.bf16.msra.mxu0 %v2966_v17  ;;  %2575 = vmatprep.mubr.msk.bf16.mxu0 %vm3137_vm1, %v3136_v51 }
 0x205   :  { %2561 = vmatprep.subr.bf16.mxu0 %v3136_v51  ;;  %2595 = vmatprep.mubr.msk.bf16.mxu1 %vm3137_vm1, %v3136_v51 }
 0x206   :  { %2580 = vmatpush3.bf16.msra.mxu1 %v2974_v27 }
 0x207   :  { %2581 = vmatprep.subr.bf16.mxu1 %v3136_v51 }
 0x208   :  { %2562 = vmatpush3.bf16.msra.mxu0 %v2967_v20 }
 0x209   :  { %2563 = vmatprep.subr.bf16.mxu0 %v3136_v51 }
 0x20a   :  { %2582 = vmatpush3.bf16.msra.mxu1 %v2975_v28 }
 0x20b   :  { %2583 = vmatprep.subr.bf16.mxu1 %v3136_v51 }
 0x20c   :  { %2564 = vmatpush3.bf16.msra.mxu0 %v2968_v21 }
 0x20d   :  { %2565 = vmatprep.subr.bf16.mxu0 %v3136_v51 }
 0x20e   :  { %2584 = vmatpush3.bf16.msra.mxu1 %v2976_v29 }
 0x20f   :  { %2585 = vmatprep.subr.bf16.mxu1 %v3136_v51 }
 0x210   :  { %2566 = vmatpush3.bf16.msra.mxu0 %v2969_v22 }
 0x211   :  { %2567 = vmatprep.subr.bf16.mxu0 %v3136_v51 }
 0x212   :  { %2586 = vmatpush3.bf16.msra.mxu1 %v2977_v30 }
 0x213   :  { %2587 = vmatprep.subr.bf16.mxu1 %v3136_v51 }
 0x214   :  { %2568 = vmatpush3.bf16.msra.mxu0 %v2970_v23 }
 0x215   :  { %2569 = vmatprep.subr.bf16.mxu0 %v3136_v51 }
 0x216   :  { %2588 = vmatpush3.bf16.msra.mxu1 %v2978_v31 }
 0x217   :  { %2589 = vmatprep.subr.bf16.mxu1 %v3136_v51 }
 0x218   :  { %2570 = vmatpush3.bf16.msra.mxu0 %v2971_v24 }
 0x219   :  { %2571 = vmatprep.subr.bf16.mxu0 %v3136_v51 }
 0x21a   :  { %2590 = vmatpush3.bf16.msra.mxu1 %v2979_v32 }
 0x21b   :  { %2591 = vmatprep.subr.bf16.mxu1 %v3136_v51 }
 0x21c   :  { %2572 = vmatpush3.bf16.msra.mxu0 %v2972_v25 }
 0x21d   :  { %2573 = vmatprep.subr.bf16.mxu0 %v3136_v51 }
 0x21e   :  { %2592 = vmatpush3.bf16.msra.mxu1 %v2980_v48 }
 0x21f   :  { %2593 = vmatprep.subr.bf16.mxu1 %v3136_v51 }
 0x220   :  { %2574 = vmatpush3.bf16.msra.mxu0 %v2973_v26 }
 0x222   :  { %2594 = vmatpush3.bf16.msra.mxu1 %v2981_v49 }
 0x2d6   :  { %v2513_v33 = vpop.f32.mrb[4].mxu0  ;;  %v2535_v34 = vpop.f32.mrb[4].mxu1 }
 0x2d7   :  { %v2514_v36 = vpop.f32.mrb[5].mxu0  ;;  %v2536_v37 = vpop.f32.mrb[5].mxu1 }
 0x2d8   :  { %v2515_v38 = vadd.f32 %v2514_v36, %v2513_v33  ;;  %v2537_v39 = vadd.f32 %v2536_v37, %v2535_v34  ;;  %v2516_v40 = vpop.f32.mrb[6].mxu0  ;;  %v2538_v41 = vpop.f32.mrb[6].mxu1 }
 0x2d9   :  { %v2517_v42 = vpop.f32.mrb[7].mxu0  ;;  %v2539_v43 = vpop.f32.mrb[7].mxu1 }
 0x2da   :  { %v1950_v44 = vadd.f32 %v2515_v38, %v2446_v35 }
 0x2dc   :  { %v1990_v45 = vadd.f32 %v2537_v39, %v1950_v44 }
 0x2de   :  { %v1995_v46 = vmax.f32 %v1990_v45, 0.0 }
 0x2e0   :  { %v1996_v47 = vpack.c.bf16 %v1995_v46, %v1995_v46 }
 0x2e2   :  { %2576 = vmatmul.mubr.bf16.vlgmr.msra.gmra.mrb[8].mxu0 %v1996_v47 }
 0x3b5   :  { %v2102_v52 = vpop.f32.mrb[8].mxu0 }
 0x3b6   :  { %v2103_v53 = vadd.f32 %v2479_v50, %v2102_v52  ;;  %v2577_v54 = vpop.f32.mrb[9].mxu0 }
 0x3b7   :  { %v2105_v55 = vpop.f32.mrb[10].mxu0 }
 0x3b8   :  { %v2108_v56 = vmax.f32 %v2103_v53, 0.0  ;;  %v2578_v57 = vpop.f32.mrb[11].mxu0 }
 0x3ba   :  { %v2109_v58 = vpack.c.bf16 %v2108_v56, %v2108_v56 }
 0x3bc   :  { %2596 = vmatmul.mubr.bf16.vlgmr.msra.gmra.mrb[8].mxu1 %v2109_v58 }
 0x48f   :  { %v2215_v60 = vpop.f32.mrb[8].mxu1 }
 0x490   :  { %v2216_v51 = vadd.f32 %v2488_v59, %v2215_v60  ;;  %v2597_v61 = vpop.f32.mrb[9].mxu1 }
 0x491   :  { %v2218_v62 = vpop.f32.mrb[10].mxu1 }
 0x492   :  { %2221 = vmax.xlane.f32.xlu0 %v2216_v51  ;;  %v2598_v63 = vpop.f32.mrb[11].mxu1 }
 0x51f   :  { %v2222_v0 = vpop.xlane.xlu0 %2221 }
 0x520   :  { %v2223_v1 = vsub.f32 %v2216_v51, %v2222_v0 }
 0x522   :  { %v2224_v2 = vmul.f32 1.442695, %v2223_v1 }
 0x524   :  { %2982 = vpow2.f32 %v2224_v2 }
 0x52e   :  { %v2983_v3 = vpop.eup %2982 }
 0x52f   :  { %2226 = vadd.xlane.f32.xlu0 %v2983_v3 }
 0x5bc   :  { %v2227_v4 = vpop.xlane.xlu0 %2226 }
 0x5bd   :  { %2984 = vrcp.f32 %v2227_v4 }
 0x5c7   :  { %v2985_v5 = vpop.eup %2984 }
 0x5c8   :  { %v2229_v6 = vmul.f32 %v2985_v5, %v2983_v3 }
 0x5ca   :  { %2230 = vst [vmem:[#allocation11] sm:$0xff] %v2229_v6 }
 0x5cb   :  { %3107 = shalt.err (!%p3104_p2)
}
 0x5cc   :  { %s3108_s1 = scalar_lea.hbm %s3309_s9, 128 }
 0x5cd   :  { %p3109_p3 = scmp.ne.s32.totalorder %s3309_s9, %s3108_s1  ;;  %p3112_p4 = scmp.lt.u32.totalorder %s3108_s1, %s3309_s9 }
 0x5cf   :  { %p3114_p5 = pnand %p3112_p4, %p3109_p3 }
 0x5d1   :  { %3117 = shalt.err (!%p3114_p5)
}
 0x5d2   :  { %2240 = dma.vmem_to_hbm [thread:$0]  %s2238_s11, 128, %s3309_s9, [#allocation4]  }
 0x5d3   :  { %3124 = dma.done.wait [#allocation4], 128  }
 0x5d4   :  { %3125 = vsyncadd [#allocation4], 4294967168 }
 0x5d5   :  { %2244 = vsyncpa [#allocation3], 1 }
 0x5d6   :  { %2245 = vsyncpa [#allocation6], 1 }
 0x5d7   :  { %2246 = vsyncpa [#allocation9], 1 }
 0x5d8   :  { %2247 = vsyncpa [#allocation4], 1 }

</bundles_post_ra>
